<compile_context>
chip_gen: v5e
topology: v5e:2x2
jax: 0.10.0
libtpu: 0.0.40
codegen_flags: <defaults>
</compile_context>

<pallas_src>
import jax
import jax.numpy as jnp
from jax.experimental import pallas as pl
from jax.experimental.pallas import tpu as pltpu

EPS = 1e-5


def _net_kernel(x_ref, w0_ref, bn0_ref, w1_ref, sp_ref, o_ref):
    x = x_ref[...].astype(jnp.float32)            # (B, in_dim)
    inv_b = 1.0 / x.shape[0]

    # ---- lin0 (bias cancelled by batch-stat BN) + BN0 + ReLU -----------------
    h0 = jnp.dot(x, w0_ref[...], preferred_element_type=jnp.float32)   # (B, 768)
    s0 = jnp.sum(h0, axis=0, keepdims=True)       # back-to-back XLU reduces
    q0 = jnp.sum(h0 * h0, axis=0, keepdims=True)
    mu0 = s0 * inv_b
    var0 = jnp.maximum(q0 * inv_b - mu0 * mu0, 0.0)        # biased var, clamped
    g0 = bn0_ref[0:1, :]                          # (1, 768) gamma (0 in padding)
    be0 = bn0_ref[1:2, :]                         # (1, 768) beta
    scale0 = g0 * jax.lax.rsqrt(var0 + EPS)
    shift0 = be0 - mu0 * scale0
    h0 = jnp.maximum(h0 * scale0 + shift0, 0.0)

    # ---- lin1 (bias cancelled by batch-stat BN) + BN1 + ReLU -----------------
    h1 = jnp.dot(h0, w1_ref[...], preferred_element_type=jnp.float32)  # (B, 128)
    s1 = jnp.sum(h1, axis=0, keepdims=True)
    q1 = jnp.sum(h1 * h1, axis=0, keepdims=True)
    mu1 = s1 * inv_b
    var1 = jnp.maximum(q1 * inv_b - mu1 * mu1, 0.0)
    g1 = sp_ref[0:1, :]                           # (1, 128) gamma (0 in padding)
    be1 = sp_ref[1:2, :]                          # (1, 128) beta
    scale1 = g1 * jax.lax.rsqrt(var1 + EPS)
    shift1 = be1 - mu1 * scale1
    h1 = jnp.maximum(h1 * scale1 + shift1, 0.0)

    # ---- lin2: (B,128)*(1,128) VPU mul + lane reduce (padded cols are 0) -----
    w2_row = sp_ref[2:3, :]                       # (1, 128)
    b2 = sp_ref[3:4, 0:1]                         # (1, 1)
    out = jnp.sum(h1 * w2_row, axis=-1, keepdims=True) + b2
    o_ref[...] = out.astype(o_ref.dtype)


def net_forward(x, kp, *, batch=8):
    """x: (N*batch, in_dim) f32 — each contiguous `batch`-row group is one
    independent Net.forward call (BN stats are per group).  kp: packed params."""
    total, in_dim = x.shape
    assert total % batch == 0
    n_steps = total // batch

    resident = lambda arr: pl.BlockSpec(arr.shape, lambda i: (0, 0))  # DMA'd once
    return pl.pallas_call(
        _net_kernel,
        out_shape=jax.ShapeDtypeStruct((total, 1), jnp.float32),
        grid=(n_steps,),
        in_specs=[
            pl.BlockSpec((batch, in_dim), lambda i: (i, 0)),   # x: moves per step
            resident(kp["w0"]),                                # (in_dim, 768)
            resident(kp["bn0"]),                               # (2, 768)
            resident(kp["w1"]),                                # (768, 128)
            resident(kp["small"]),                             # (4, 128)
        ],
        out_specs=pl.BlockSpec((batch, 1), lambda i: (i, 0)),
        compiler_params=pltpu.CompilerParams(
            dimension_semantics=("parallel",)),                # v7x: both TCs
    )(x, kp["w0"], kp["bn0"], kp["w1"], kp["small"])


def init_params(key, in_dim, h0=750, h1=20, h0_pad=768, h1_pad=128):
    """PyTorch-like uniform init for Linear, BN gamma=1/beta=0.
    Returns (kernel_params_packed_padded, reference_params_unpadded)."""
    ks = jax.random.split(key, 6)

    def lin(kw, kb, fan_in, fan_out):
        bound = 1.0 / jnp.sqrt(fan_in)
        w = jax.random.uniform(kw, (fan_in, fan_out), jnp.float32, -bound, bound)
        b = jax.random.uniform(kb, (1, fan_out), jnp.float32, -bound, bound)
        return w, b

    w0, b0 = lin(ks[0], ks[1], in_dim, h0)
    w1, b1 = lin(ks[2], ks[3], h0, h1)
    w2, b2 = lin(ks[4], ks[5], h1, 1)
    g0, be0 = jnp.ones((1, h0), jnp.float32), jnp.zeros((1, h0), jnp.float32)
    g1, be1 = jnp.ones((1, h1), jnp.float32), jnp.zeros((1, h1), jnp.float32)

    # Packed / padded kernel params.  Gamma padding MUST be 0 (not 1) and padded
    # weight rows/cols 0 so padded features stay exactly 0 through BN + ReLU.
    w0_p = jnp.zeros((in_dim, h0_pad), jnp.float32).at[:, :h0].set(w0)
    bn0_p = (jnp.zeros((2, h0_pad), jnp.float32)
             .at[0, :h0].set(g0[0]).at[1, :h0].set(be0[0]))
    w1_p = jnp.zeros((h0_pad, h1_pad), jnp.float32).at[:h0, :h1].set(w1)
    small = (jnp.zeros((4, h1_pad), jnp.float32)
             .at[0, :h1].set(g1[0])          # gamma1
             .at[1, :h1].set(be1[0])         # beta1
             .at[2, :h1].set(w2[:, 0])       # w2 as a lane row
             .at[3, 0].set(b2[0, 0]))        # b2 scalar

    kernel_params = dict(w0=w0_p, bn0=bn0_p, w1=w1_p, small=small)
    ref_params = dict(w0=w0, b0=b0, g0=g0, be0=be0,
                      w1=w1, b1=b1, g1=g1, be1=be1, w2=w2, b2=b2)
    return kernel_params, ref_params


def net_forward_ref(x, rp, *, batch=8):
    """Pure-JAX reference following the PyTorch forward exactly (with biases),
    applied independently to each batch-row group."""
    def one(xb):
        h = xb @ rp["w0"] + rp["b0"]
        mu, var = jnp.mean(h, 0, keepdims=True), jnp.var(h, 0, keepdims=True)
        h = jnp.maximum((h - mu) * jax.lax.rsqrt(var + EPS) * rp["g0"] + rp["be0"], 0.0)
        h = h @ rp["w1"] + rp["b1"]
        mu, var = jnp.mean(h, 0, keepdims=True), jnp.var(h, 0, keepdims=True)
        h = jnp.maximum((h - mu) * jax.lax.rsqrt(var + EPS) * rp["g1"] + rp["be1"], 0.0)
        return h @ rp["w2"] + rp["b2"]
    xs = x.reshape(-1, batch, x.shape[-1])
    return jax.vmap(one)(xs).reshape(-1, 1)


if __name__ == "__main__":
    key = jax.random.PRNGKey(0)
    k_in, k_par = jax.random.split(key)

    B, N_BATCHES, IN_DIM = 8, 4, 32          # 4 independent batches of 8 rows
    x = jax.random.normal(k_in, (N_BATCHES * B, IN_DIM), jnp.float32)
    kparams, rparams = init_params(k_par, IN_DIM)

    out = net_forward(x, kparams, batch=B)
    jax.block_until_ready(out)

    ref = net_forward_ref(x, rparams, batch=B)
    assert out.shape == (N_BATCHES * B, 1)
    assert jnp.allclose(out, ref, atol=1e-4, rtol=1e-4)

    print("KERNEL_OK")
</pallas_src>

<mosaic_0001>
module attributes {stable_mosaic.version = 11 : i64} {
  func.func @_net_kernel(%arg0: i32, %arg1: memref<8x32xf32, #tpu.memory_space<vmem>>, %arg2: memref<32x768xf32, #tpu.memory_space<vmem>>, %arg3: memref<2x768xf32, #tpu.memory_space<vmem>>, %arg4: memref<768x128xf32, #tpu.memory_space<vmem>>, %arg5: memref<4x128xf32, #tpu.memory_space<vmem>>, %arg6: memref<8x1xf32, #tpu.memory_space<vmem>>) attributes {dimension_semantics = [#tpu.dimension_semantics<parallel>], iteration_bounds = array<i64: 4>, scalar_prefetch = 0 : i64, scratch_operands = 0 : i64, tpu.core_type = #tpu.core_type<tc>, window_params = [{transform_indices = @transform_0, window_bounds = array<i64: 8, 32>}, {pipeline_mode = #tpu.pipeline_mode<synchronous>, transform_indices = @transform_1, window_bounds = array<i64: 32, 768>}, {pipeline_mode = #tpu.pipeline_mode<synchronous>, transform_indices = @transform_2, window_bounds = array<i64: 2, 768>}, {pipeline_mode = #tpu.pipeline_mode<synchronous>, transform_indices = @transform_3, window_bounds = array<i64: 768, 128>}, {pipeline_mode = #tpu.pipeline_mode<synchronous>, transform_indices = @transform_4, window_bounds = array<i64: 4, 128>}, {transform_indices = @transform_5, window_bounds = array<i64: 8, 1>}]} {
    %c0 = arith.constant 0 : index
    %c0_0 = arith.constant 0 : index
    %0 = vector.load %arg1[%c0, %c0_0] : memref<8x32xf32, #tpu.memory_space<vmem>>, vector<8x32xf32>
    %c0_1 = arith.constant 0 : index
    %c0_2 = arith.constant 0 : index
    %1 = vector.load %arg2[%c0_1, %c0_2] : memref<32x768xf32, #tpu.memory_space<vmem>>, vector<32x768xf32>
    %cst = arith.constant dense<0.000000e+00> : vector<8x768xf32>
    %2 = tpu.matmul %0, %1, %cst {dimension_numbers = #tpu.dot_dimension_numbers<[1], [0], [0], [1], [0, 0, 1, 1], [], []>} : vector<8x32xf32>, vector<32x768xf32>, vector<8x768xf32> -> vector<8x768xf32>
    %cst_3 = arith.constant dense<0.000000e+00> : vector<768xf32>
    %3 = vector.multi_reduction <add>, %2, %cst_3 [0] : vector<8x768xf32> to vector<768xf32>
    %4 = vector.shape_cast %3 : vector<768xf32> to vector<1x768xf32>
    %5 = arith.mulf %2, %2 : vector<8x768xf32>
    %cst_4 = arith.constant dense<0.000000e+00> : vector<768xf32>
    %6 = vector.multi_reduction <add>, %5, %cst_4 [0] : vector<8x768xf32> to vector<768xf32>
    %7 = vector.shape_cast %6 : vector<768xf32> to vector<1x768xf32>
    %cst_5 = arith.constant 1.250000e-01 : f32
    %8 = vector.broadcast %cst_5 : f32 to vector<1x768xf32>
    %9 = arith.mulf %4, %8 : vector<1x768xf32>
    %cst_6 = arith.constant 1.250000e-01 : f32
    %10 = vector.broadcast %cst_6 : f32 to vector<1x768xf32>
    %11 = arith.mulf %7, %10 : vector<1x768xf32>
    %12 = arith.mulf %9, %9 : vector<1x768xf32>
    %13 = arith.subf %11, %12 : vector<1x768xf32>
    %cst_7 = arith.constant 0.000000e+00 : f32
    %14 = vector.broadcast %cst_7 : f32 to vector<1x768xf32>
    %15 = arith.maximumf %13, %14 : vector<1x768xf32>
    %c0_8 = arith.constant 0 : index
    %c0_9 = arith.constant 0 : index
    %16 = vector.load %arg3[%c0_8, %c0_9] : memref<2x768xf32, #tpu.memory_space<vmem>>, vector<1x768xf32>
    %c1 = arith.constant 1 : index
    %c0_10 = arith.constant 0 : index
    %17 = vector.load %arg3[%c1, %c0_10] : memref<2x768xf32, #tpu.memory_space<vmem>>, vector<1x768xf32>
    %cst_11 = arith.constant 9.99999974E-6 : f32
    %18 = vector.broadcast %cst_11 : f32 to vector<1x768xf32>
    %19 = arith.addf %15, %18 : vector<1x768xf32>
    %20 = math.rsqrt %19 : vector<1x768xf32>
    %21 = arith.mulf %16, %20 : vector<1x768xf32>
    %22 = arith.mulf %9, %21 : vector<1x768xf32>
    %23 = arith.subf %17, %22 : vector<1x768xf32>
    %24 = vector.broadcast %21 : vector<1x768xf32> to vector<8x768xf32>
    %25 = arith.mulf %2, %24 : vector<8x768xf32>
    %26 = vector.broadcast %23 : vector<1x768xf32> to vector<8x768xf32>
    %27 = arith.addf %25, %26 : vector<8x768xf32>
    %cst_12 = arith.constant 0.000000e+00 : f32
    %28 = vector.broadcast %cst_12 : f32 to vector<8x768xf32>
    %29 = arith.maximumf %27, %28 : vector<8x768xf32>
    %c0_13 = arith.constant 0 : index
    %c0_14 = arith.constant 0 : index
    %30 = vector.load %arg4[%c0_13, %c0_14] : memref<768x128xf32, #tpu.memory_space<vmem>>, vector<768x128xf32>
    %cst_15 = arith.constant dense<0.000000e+00> : vector<8x128xf32>
    %31 = tpu.matmul %29, %30, %cst_15 {dimension_numbers = #tpu.dot_dimension_numbers<[1], [0], [0], [1], [0, 0, 1, 1], [], []>} : vector<8x768xf32>, vector<768x128xf32>, vector<8x128xf32> -> vector<8x128xf32>
    %cst_16 = arith.constant dense<0.000000e+00> : vector<128xf32>
    %32 = vector.multi_reduction <add>, %31, %cst_16 [0] : vector<8x128xf32> to vector<128xf32>
    %33 = vector.shape_cast %32 : vector<128xf32> to vector<1x128xf32>
    %34 = arith.mulf %31, %31 : vector<8x128xf32>
    %cst_17 = arith.constant dense<0.000000e+00> : vector<128xf32>
    %35 = vector.multi_reduction <add>, %34, %cst_17 [0] : vector<8x128xf32> to vector<128xf32>
    %36 = vector.shape_cast %35 : vector<128xf32> to vector<1x128xf32>
    %cst_18 = arith.constant 1.250000e-01 : f32
    %37 = vector.broadcast %cst_18 : f32 to vector<1x128xf32>
    %38 = arith.mulf %33, %37 : vector<1x128xf32>
    %cst_19 = arith.constant 1.250000e-01 : f32
    %39 = vector.broadcast %cst_19 : f32 to vector<1x128xf32>
    %40 = arith.mulf %36, %39 : vector<1x128xf32>
    %41 = arith.mulf %38, %38 : vector<1x128xf32>
    %42 = arith.subf %40, %41 : vector<1x128xf32>
    %cst_20 = arith.constant 0.000000e+00 : f32
    %43 = vector.broadcast %cst_20 : f32 to vector<1x128xf32>
    %44 = arith.maximumf %42, %43 : vector<1x128xf32>
    %c0_21 = arith.constant 0 : index
    %c0_22 = arith.constant 0 : index
    %45 = vector.load %arg5[%c0_21, %c0_22] : memref<4x128xf32, #tpu.memory_space<vmem>>, vector<1x128xf32>
    %c1_23 = arith.constant 1 : index
    %c0_24 = arith.constant 0 : index
    %46 = vector.load %arg5[%c1_23, %c0_24] : memref<4x128xf32, #tpu.memory_space<vmem>>, vector<1x128xf32>
    %cst_25 = arith.constant 9.99999974E-6 : f32
    %47 = vector.broadcast %cst_25 : f32 to vector<1x128xf32>
    %48 = arith.addf %44, %47 : vector<1x128xf32>
    %49 = math.rsqrt %48 : vector<1x128xf32>
    %50 = arith.mulf %45, %49 : vector<1x128xf32>
    %51 = arith.mulf %38, %50 : vector<1x128xf32>
    %52 = arith.subf %46, %51 : vector<1x128xf32>
    %53 = vector.broadcast %50 : vector<1x128xf32> to vector<8x128xf32>
    %54 = arith.mulf %31, %53 : vector<8x128xf32>
    %55 = vector.broadcast %52 : vector<1x128xf32> to vector<8x128xf32>
    %56 = arith.addf %54, %55 : vector<8x128xf32>
    %cst_26 = arith.constant 0.000000e+00 : f32
    %57 = vector.broadcast %cst_26 : f32 to vector<8x128xf32>
    %58 = arith.maximumf %56, %57 : vector<8x128xf32>
    %c2 = arith.constant 2 : index
    %c0_27 = arith.constant 0 : index
    %59 = vector.load %arg5[%c2, %c0_27] : memref<4x128xf32, #tpu.memory_space<vmem>>, vector<1x128xf32>
    %c3 = arith.constant 3 : index
    %c0_28 = arith.constant 0 : index
    %60 = vector.load %arg5[%c3, %c0_28] : memref<4x128xf32, #tpu.memory_space<vmem>>, vector<1x1xf32>
    %61 = vector.broadcast %59 : vector<1x128xf32> to vector<8x128xf32>
    %62 = arith.mulf %58, %61 : vector<8x128xf32>
    %cst_29 = arith.constant dense<0.000000e+00> : vector<8xf32>
    %63 = vector.multi_reduction <add>, %62, %cst_29 [1] : vector<8x128xf32> to vector<8xf32>
    %64 = vector.shape_cast %63 : vector<8xf32> to vector<8x1xf32>
    %65 = vector.broadcast %60 : vector<1x1xf32> to vector<8x1xf32>
    %66 = arith.addf %64, %65 : vector<8x1xf32>
    %c0_30 = arith.constant 0 : index
    %c0_31 = arith.constant 0 : index
    %67 = vector.load %arg6[%c0_30, %c0_31] : memref<8x1xf32, #tpu.memory_space<vmem>>, vector<8x1xf32>
    tpu.vector_store %arg6[%c0_30, %c0_31], %66 {strides = array<i32>} : memref<8x1xf32, #tpu.memory_space<vmem>>, vector<8x1xf32>,
    return
  }
  func.func @transform_0(%arg0: i32) -> (i32, i32) {
    %c0_i32 = arith.constant 0 : i32
    %c0_i32_0 = arith.constant 0 : i32
    return %arg0, %c0_i32 : i32, i32
  }
  func.func @transform_1(%arg0: i32) -> (i32, i32) {
    %c0_i32 = arith.constant 0 : i32
    %c0_i32_0 = arith.constant 0 : i32
    %c0_i32_1 = arith.constant 0 : i32
    return %c0_i32, %c0_i32_0 : i32, i32
  }
  func.func @transform_2(%arg0: i32) -> (i32, i32) {
    %c0_i32 = arith.constant 0 : i32
    %c0_i32_0 = arith.constant 0 : i32
    %c0_i32_1 = arith.constant 0 : i32
    return %c0_i32, %c0_i32_0 : i32, i32
  }
  func.func @transform_3(%arg0: i32) -> (i32, i32) {
    %c0_i32 = arith.constant 0 : i32
    %c0_i32_0 = arith.constant 0 : i32
    %c0_i32_1 = arith.constant 0 : i32
    return %c0_i32, %c0_i32_0 : i32, i32
  }
  func.func @transform_4(%arg0: i32) -> (i32, i32) {
    %c0_i32 = arith.constant 0 : i32
    %c0_i32_0 = arith.constant 0 : i32
    %c0_i32_1 = arith.constant 0 : i32
    return %c0_i32, %c0_i32_0 : i32, i32
  }
  func.func @transform_5(%arg0: i32) -> (i32, i32) {
    %c0_i32 = arith.constant 0 : i32
    %c0_i32_0 = arith.constant 0 : i32
    return %arg0, %c0_i32 : i32, i32
  }
}

</mosaic_0001>

<bundles_post_ra>
// kernel: tpu_custom_call.1
= control target key start
LH: loop header
LB: loop body
LE: loop exit
PB: predicated region body
PF: predicated region fallthrough
CT: control target
= control target key end

     0   :  { %10 = vsyncpa [#allocation3], 0  ;;  %s1772_s0 = inlined_call_operand.hbm [shape: f32[32,32], index: 0, kind: input, shape index: {}]   ;;  %s1773_s1 = inlined_call_operand.hbm [shape: f32[32,768], index: 1, kind: input, shape index: {}]   ;;  %s1774_s2 = inlined_call_operand.hbm [shape: f32[2,768], index: 2, kind: input, shape index: {}]   ;;  %s1775_s3 = inlined_call_operand.hbm [shape: f32[768,128], index: 3, kind: input, shape index: {}]   ;;  %s1776_s4 = inlined_call_operand.hbm [shape: f32[4,128], index: 4, kind: input, shape index: {}]   ;;  %s1777_s5 = inlined_call_operand.vmem [shape: f32[32,1], index: 5, kind: output, shape index: {}]  }
   0x1   :  { %12 = vsyncpa [#allocation3 + $0x1], 0 }
   0x2   :  { %13 = vsyncpa [#allocation5], 0 }
   0x3   :  { %14 = vsyncpa [#allocation8], 0  ;;  %s1445_s18 = smov 0   ;;  %s1447_s19 = smov 0  }
   0x4   :  { %s1449_s20 = smov 0   ;;  %s1451_s21 = smov 0  }
   0x5 LB: > { %s172_s24 = sshll.u32 %s1773_s1, 4  ;;  %s1469_s25 = sadd.s32 4294967295, %s1405_s21   ;;  %s1405_s21 = sphi %s1451_s21, %s1793_s21   ;;  %s1401_s20 = sphi %s1449_s20, %s1792_s20   ;;  %s1397_s19 = sphi %s1447_s19, %s1791_s19   ;;  %s1393_s18 = sphi %s1445_s18, %s1790_s18   ;;  %s173_s24 = int_to_ptr.hbm [resolvable:$true] %s172_s24 }
   0x6   : > { %p1090_p0 = scmp.ge.s32.totalorder %s1405_s21, 1  ;;  %p41_p1 = scmp.eq.s32.totalorder %s1469_s25, 0 }
   0x7   : > { %p161_p2 = scmp.lt.s32.totalorder %s1405_s21, 5  ;;  %s1407_s27 = smov [#allocation4]  }
   0x8   : > { %s174_s28 = sshll.u32 %s1407_s27, 4  ;;  %s198_s6 = sshll.u32 %s1775_s3, 4  ;;  %s175_s28 = int_to_ptr.vmem [resolvable:$true] %s174_s28  ;;  %s199_s6 = int_to_ptr.hbm [resolvable:$true] %s198_s6 }
   0x9   : > { %p1474_p3 = pnand %p1090_p0, %p161_p2  ;;  %s1408_s8 = smov [#allocation7]  }
   0xa   : > { %s200_s9 = sshll.u32 %s1408_s8, 4  ;;  %s1409_s10 = smov 768   ;;  %s201_s9 = int_to_ptr.vmem [resolvable:$true] %s200_s9 }
   0xb   : > { %p1131_p4 = pneg %p1474_p3  ;;  %s1410_s11 = smov 48  }
   0xc   : > { %s1411_s12 = smov 128   ;;  %s1412_s13 = smov 8  }
   0xd   : > { %p1485_p5 = pnand %p1131_p4, %p41_p1  ;;  %s187_s16 = sshll.u32 %s1774_s2, 4  ;;  %s188_s16 = int_to_ptr.hbm [resolvable:$true] %s187_s16 }
   0xe   : > { %s1413_s17 = smov [#allocation6]   ;;  %s213_s27 = sshll.u32 %s1776_s4, 4  ;;  %s214_s27 = int_to_ptr.hbm [resolvable:$true] %s213_s27 }
   0xf   : > { %1134 = dma.hbm_to_vmem [thread:$0]  (!%p1485_p5), %s173_s24, 3072, %s175_s28, [#allocation5], %s1409_s10, %s1409_s10, %s1410_s11  }
  0x10   : > { %1140 = dma.hbm_to_vmem [thread:$0]  (!%p1485_p5), %s199_s6, 12288, %s201_s9, [#allocation8], %s1411_s12, %s1411_s12, %s1412_s13  }
  0x11   : > { %s189_s22 = sshll.u32 %s1413_s17, 4  ;;  %s1414_s28 = smov [#allocation9]   ;;  %s190_s22 = int_to_ptr.vmem [resolvable:$true] %s189_s22 }
  0x12   : > { %1137 = dma.hbm_to_vmem [thread:$0]  (!%p1485_p5), %s188_s16, 192, %s190_s22, [#allocation5]  }
  0x13   : > { %s215_s29 = sshll.u32 %s1414_s28, 4  ;;  %s1504_s30 = sadd.s32 1, %s1405_s21   ;;  %s216_s29 = int_to_ptr.vmem [resolvable:$true] %s215_s29 }
  0x14   : > { %1143 = dma.hbm_to_vmem [thread:$0]  (!%p1485_p5), %s214_s27, 64, %s216_s29, [#allocation8]  }
  0x15   : > { %s24_s6 = ssub.s32 %s1405_s21, %s1504_s30  ;;  %s27_s8 = sadd.s32 1, %s1401_s20 }
  0x16   : > { %p25_p6 = scmp.eq.s32.totalorder %s24_s6, 0  ;;  %p34_p7 = scmp.ne.s32.totalorder %s1401_s20, %s1397_s19 }
  0x17   : > { %p35_p8 = scmp.eq.s32.totalorder %s1405_s21, 0  ;;  %p40_p9 = scmp.ne.s32.totalorder %s1397_s19, %s1393_s18 }
  0x18   : > { %s1515_s9 = scalar_select %p25_p6, %s1401_s20, %s27_s8  }
  0x19   : > { %p1519_p10 = por %p41_p1, %p40_p9  ;;  %p1152_p11 = scmp.lt.s32.totalorder %s1405_s21, 4 }
  0x1a   : > { %s226_s11 = sand.u32 1, %s1401_s20   ;;  %s1097_s7 = sshll.u32 %s1405_s21, 3 }
  0x1b   : > { %p36_p12 = por %p35_p8, %p34_p7  ;;  %s1096_s12 = sshll.u32 %s226_s11, 3 }
  0x1c   : > { %s234_s15 = scalar_lea.hbm %s1772_s0, %s1097_s7  ;;  %s230_s17 = scalar_lea.vmem [#allocation2], %s1096_s12 }
  0x1d   : > { %s236_s16 = sshll.u32 %s234_s15, 4  ;;  %s238_s22 = sshll.u32 %s230_s17, 4  ;;  %s237_s16 = int_to_ptr.hbm [resolvable:$true] %s236_s16  ;;  %s239_s22 = int_to_ptr.vmem [resolvable:$true] %s238_s22 }
  0x1e   : > { %p1529_p13 = pnand %p1152_p11, %p36_p12  ;;  %s227_s23 = scalar_lea.sflag [#allocation3], %s226_s11 }
  0x1f   : > { %s1333_s24 = sshra.s32 %s237_s16, 4  ;;  %s1340_s29 = scalar_lea.hbm %s1772_s0, 32  ;;  %s1334_s24 = int_to_ptr.hbm [resolvable:$true] %s1333_s24 }
  0x20   : > { %s1335_s21 = scalar_lea.hbm %s1334_s24, 8  ;;  %p1337_p2 = pneg %p1529_p13 }
  0x21   : > { %p1336_p0 = scmp.ne.s32.totalorder %s1334_s24, %s1335_s21  ;;  %p1341_p6 = scmp.lt.s32.totalorder %s1334_s24, %s1772_s0 }
  0x22   : > { %p1342_p7 = scmp.lt.s32.totalorder %s1340_s29, %s1335_s21 }
  0x23   : > { %p1338_p4 = pnand %p1337_p2, %p1336_p0 }
  0x24   : > { %p1343_p8 = por %p1342_p7, %p1341_p6 }
  0x25   : > { %p1339_p5 = pneg %p1338_p4 }
  0x27   : > { %p1344_p9 = pnand %p1343_p8, %p1339_p5 }
  0x29   : > { %1347 = shalt.err (!%p1344_p9)
}
  0x2a   : > { %1147 = dma.hbm_to_vmem [thread:$0]  (!%p1529_p13), %s237_s16, 128, %s239_s22, %s227_s23  }
  0x2b   : > { %247 = sbr.rel (%p1474_p3) target bundleno = 589 (0x24d), region = 40  ;;  %s249_s11 = sand.u32 (!%p1474_p3), 1, %s1397_s19  }
  0x2c   : > { %s1099_s7 = sshll.u32 (!%p1474_p3), %s249_s11, 3  ;;  %s250_s12 = scalar_lea.sflag (!%p1474_p3), [#allocation3], %s249_s11 }
  0x2d   : > { %s253_s13 = scalar_lea.vmem (!%p1474_p3), [#allocation2], %s1099_s7 }
  0x30   : > { %1380 = dma.done.wait (%p1519_p10), %s250_s12, 128  }
  0x31   : > { %1382 = vsyncadd (%p1519_p10), %s250_s12, 4294967168 }
  0x32   : > { %1384 = dma.done.wait (%p41_p1), [#allocation5], 3264  }
  0x33   : > { %1386 = vsyncadd (%p41_p1), [#allocation5], 4294964032 }
  0x34   : > { %1388 = dma.done.wait (%p41_p1), [#allocation8], 12352  }
  0x35   : > { %1390 = vsyncadd (%p41_p1), [#allocation8], 4294954944  ;;  %v323_v0 = vld [vmem:[#allocation4 + $0x90] sm:$0xff]  ;;  %v324_v1 = vld [vmem:[#allocation4 + $0x98] sm:$0xff]  ;;  %vm329_vm0 = vcmask 261120   ;;  %vm645_vm15 = vcmask 1043459  }
  0x36   : > { %v317_v2 = vld [vmem:[#allocation4 + $0x60] sm:$0xff]  ;;  %345 = vmatpush.msra.mxu0 %v323_v0  ;;  %365 = vmatpush.msra.mxu1 %v324_v1  ;;  %v318_v3 = vld [vmem:[#allocation4 + $0x68] sm:$0xff]  ;;  %v311_v4 = vld [vmem:[#allocation4 + $0x30] sm:$0xff]  ;;  %p300_p1 = scmp.lt.s32.totalorder %s1469_s25, 3 }
  0x37   : > { %v312_v5 = vld [vmem:[#allocation4 + $0x38] sm:$0xff]  ;;  %v305_v6 = vld [vmem:[#allocation4] sm:$0xff]  ;;  %v306_v7 = vld [vmem:[#allocation4 + $0x8] sm:$0xff] }
  0x38   : > { %346 = vmatpush.msra.mxu0 %v317_v2  ;;  %366 = vmatpush.msra.mxu1 %v318_v3  ;;  %v304_v8 = vld [vmem:[%s253_s13] sm:$0xff]  ;;  %v325_v9 = vld [vmem:[#allocation4 + $0xa0] sm:$0xff]  ;;  %v326_v10 = vld [vmem:[#allocation4 + $0xa8] sm:$0xff]  ;;  %s1795_s25 = smov (!%p300_p1, %s1469_s25), 3 }
  0x39   : > { %v319_v11 = vld [vmem:[#allocation4 + $0x70] sm:$0xff]  ;;  %v320_v12 = vld [vmem:[#allocation4 + $0x78] sm:$0xff]  ;;  %v313_v13 = vld [vmem:[#allocation4 + $0x40] sm:$0xff]  ;;  %s1104_s26 = sshll.u32 %s1795_s25, 3 }
  0x3a   : > { %347 = vmatpush.msra.mxu0 %v311_v4  ;;  %367 = vmatpush.msra.mxu1 %v312_v5  ;;  %v314_v14 = vld [vmem:[#allocation4 + $0x48] sm:$0xff]  ;;  %v307_v15 = vld [vmem:[#allocation4 + $0x10] sm:$0xff]  ;;  %v308_v16 = vld [vmem:[#allocation4 + $0x18] sm:$0xff]  ;;  %s303_s15 = scalar_lea.vmem %s1777_s5, %s1104_s26 }
  0x3b   : > { %v327_v17 = vld [vmem:[#allocation4 + $0xb0] sm:$0xff]  ;;  %v328_v18 = vld [vmem:[#allocation4 + $0xb8] sm:$0xff]  ;;  %v321_v19 = vld [vmem:[#allocation4 + $0x80] sm:$0xff] }
  0x3c   : > { %348 = vmatpush.msra.mxu0 %v305_v6  ;;  %368 = vmatpush.msra.mxu1 %v306_v7  ;;  %v322_v20 = vld [vmem:[#allocation4 + $0x88] sm:$0xff]  ;;  %v315_v21 = vld [vmem:[#allocation4 + $0x50] sm:$0xff]  ;;  %v316_v22 = vld [vmem:[#allocation4 + $0x58] sm:$0xff] }
  0x3d   : > { %1105 = vmatmul.msk.f32.vlgmr.msra.gmra.mxu0 %vm329_vm0, %v304_v8  ;;  %1106 = vmatmul.msk.f32.vlgmr.msra.gmra.mxu1 %vm329_vm0, %v304_v8  ;;  %v309_v23 = vld [vmem:[#allocation4 + $0x20] sm:$0xff]  ;;  %v310_v24 = vld [vmem:[#allocation4 + $0x28] sm:$0xff]  ;;  %v734_v59 = vld [vmem:[#allocation7 + $0x68] sm:$0xff] }
  0x3e   : > { %385 = vmatpush.msrb.mxu0 %v325_v9  ;;  %405 = vmatpush.msrb.mxu1 %v326_v10  ;;  %v736_v43 = vld [vmem:[#allocation7 + $0x78] sm:$0xff]  ;;  %v735_v49 = vld [vmem:[#allocation7 + $0x70] sm:$0xff]  ;;  %v750_v60 = vld [vmem:[#allocation7 + $0xe8] sm:$0xff] }
  0x3f   : > { %v752_v44 = vld [vmem:[#allocation7 + $0xf8] sm:$0xff]  ;;  %817 = vmatpush.msra.mxu2 %v736_v43  ;;  %v751_v50 = vld [vmem:[#allocation7 + $0xf0] sm:$0xff]  ;;  %v733_v3 = vld [vmem:[#allocation7 + $0x60] sm:$0xff] }
  0x40   : > { %386 = vmatpush.msrb.mxu0 %v319_v11  ;;  %406 = vmatpush.msrb.mxu1 %v320_v12  ;;  %v749_v4 = vld [vmem:[#allocation7 + $0xe0] sm:$0xff]  ;;  %v732_v11 = vld [vmem:[#allocation7 + $0x58] sm:$0xff] }
  0x41   : > { %837 = vmatpush.msra.mxu3 %v752_v44  ;;  %818 = vmatpush.msra.mxu2 %v735_v49  ;;  %v748_v12 = vld [vmem:[#allocation7 + $0xd8] sm:$0xff]  ;;  %v729_v43 = vld [vmem:[#allocation7 + $0x40] sm:$0xff] }
  0x42   : > { %387 = vmatpush.msrb.mxu0 %v313_v13  ;;  %407 = vmatpush.msrb.mxu1 %v314_v14 }
  0x43   : > { %838 = vmatpush.msra.mxu3 %v751_v50  ;;  %819 = vmatpush.msra.mxu2 %v734_v59 }
  0x44   : > { %388 = vmatpush.msrb.mxu0 %v307_v15  ;;  %408 = vmatpush.msrb.mxu1 %v308_v16 }
  0x45   : > { %1107 = vmatmul.msk.f32.vlgmr.msrb.gmra.mxu0 %vm329_vm0, %v304_v8  ;;  %1108 = vmatmul.msk.f32.vlgmr.msrb.gmra.mxu1 %vm329_vm0, %v304_v8 }
  0x46   : > { %425 = vmatpush.msra.mxu0 %v327_v17  ;;  %445 = vmatpush.msra.mxu1 %v328_v18 }
  0x47   : > { %839 = vmatpush.msra.mxu3 %v750_v60  ;;  %820 = vmatpush.msra.mxu2 %v733_v3 }
  0x48   : > { %426 = vmatpush.msra.mxu0 %v321_v19  ;;  %446 = vmatpush.msra.mxu1 %v322_v20 }
  0x49   : > { %840 = vmatpush.msra.mxu3 %v749_v4  ;;  %821 = vmatpush.msra.mxu2 %v732_v11  ;;  %v742_v11 = vld [vmem:[#allocation7 + $0xa8] sm:$0xff] }
  0x4a   : > { %427 = vmatpush.msra.mxu0 %v315_v21  ;;  %447 = vmatpush.msra.mxu1 %v316_v22  ;;  %v731_v22 = vld [vmem:[#allocation7 + $0x50] sm:$0xff] }
  0x4b   : > { %841 = vmatpush.msra.mxu3 %v748_v12  ;;  %822 = vmatpush.msra.mxu2 %v731_v22 }
  0x4c   : > { %428 = vmatpush.msra.mxu0 %v309_v23  ;;  %448 = vmatpush.msra.mxu1 %v310_v24  ;;  %v747_v23 = vld [vmem:[#allocation7 + $0xd0] sm:$0xff] }
  0x4d   : > { %1109 = vmatmul.msk.f32.vlgmr.msra.gmra.mxu0 %vm329_vm0, %v304_v8  ;;  %1110 = vmatmul.msk.f32.vlgmr.msra.gmra.mxu1 %vm329_vm0, %v304_v8 }
  0x4e   : > { %842 = vmatpush.msra.mxu3 %v747_v23 }
  0xba   : > { %v1564_v25 = vpop.f32.mrf.mxu0  ;;  %v1566_v26 = vpop.f32.mrf.mxu1 }
  0xbb   : > { %v453_v27 = vrot.slane %v1564_v25, 4  ;;  %v489_v28 = vmul.f32 %v1564_v25, %v1564_v25  ;;  %v459_v29 = vrot.slane %v1566_v26, 4  ;;  %v490_v30 = vmul.f32 %v1566_v26, %v1566_v26 }
  0xbd   : > { %v454_v31 = vadd.f32 %v453_v27, %v1564_v25  ;;  %v495_v32 = vrot.slane %v489_v28, 4  ;;  %v460_v33 = vadd.f32 %v459_v29, %v1566_v26  ;;  %v501_v34 = vrot.slane %v490_v30, 4 }
  0xbf   : > { %v455_v35 = vrot.slane %v454_v31, 2  ;;  %v496_v36 = vadd.f32 %v495_v32, %v489_v28  ;;  %v461_v37 = vrot.slane %v460_v33, 2  ;;  %v502_v38 = vadd.f32 %v501_v34, %v490_v30  ;;  %v730_v34 = vld [vmem:[#allocation7 + $0x48] sm:$0xff] }
  0xc0   : > { %823 = vmatpush.msra.mxu2 %v730_v34 }
  0xc1   : > { %v456_v39 = vadd.f32 %v455_v35, %v454_v31  ;;  %v497_v40 = vrot.slane %v496_v36, 2  ;;  %v462_v41 = vadd.f32 %v461_v37, %v460_v33  ;;  %v503_v42 = vrot.slane %v502_v38, 2  ;;  %v746_v35 = vld [vmem:[#allocation7 + $0xc8] sm:$0xff] }
  0xc2   : > { %v1576_v45 = vpop.f32.mrf.mxu0  ;;  %v1578_v46 = vpop.f32.mrf.mxu1  ;;  %843 = vmatpush.msra.mxu3 %v746_v35  ;;  %824 = vmatpush.msra.mxu2 %v729_v43  ;;  %v766_v43 = vld [vmem:[#allocation7 + $0x168] sm:$0xff] }
  0xc3   : > { %v463_v47 = vrot.slane %v462_v41, 1  ;;  %v504_v48 = vadd.f32 %v503_v42, %v502_v38  ;;  %v465_v51 = vrot.slane %v1576_v45, 4  ;;  %v491_v52 = vmul.f32 %v1576_v45, %v1576_v45 }
  0xc4   : > { %v471_v53 = vrot.slane %v1578_v46, 4  ;;  %v492_v54 = vmul.f32 %v1578_v46, %v1578_v46  ;;  %v457_v55 = vrot.slane %v456_v39, 1  ;;  %v498_v56 = vadd.f32 %v497_v40, %v496_v36 }
  0xc5   : > { %v464_v57 = vadd.f32 %v463_v47, %v462_v41  ;;  %v505_v58 = vrot.slane %v504_v48, 1  ;;  %v466_v61 = vadd.f32 %v465_v51, %v1576_v45  ;;  %v507_v62 = vrot.slane %v491_v52, 4  ;;  %v745_v51 = vld [vmem:[#allocation7 + $0xc0] sm:$0xff] }
  0xc6   : > { %v472_v63 = vadd.f32 %v471_v53, %v1578_v46  ;;  %v513_v0 = vrot.slane %v492_v54, 4  ;;  %v458_v9 = vadd.f32 %v457_v55, %v456_v39  ;;  %v499_v10 = vrot.slane %v498_v56, 1  ;;  %844 = vmatpush.msra.mxu3 %v745_v51  ;;  %v744_v55 = vld [vmem:[#allocation7 + $0xb8] sm:$0xff]  ;;  %v722_v51 = vld [vmem:[#allocation7 + $0x8] sm:$0xff] }
  0xc7   : > { %v506_v1 = vadd.f32 %v505_v58, %v504_v48  ;;  %v1588_v2 = vmul.f32 0.125, %v464_v57  ;;  %v467_v5 = vrot.slane %v466_v61, 2  ;;  %v508_v6 = vadd.f32 %v507_v62, %v491_v52 }
  0xc8   : > { %v473_v7 = vrot.slane %v472_v63, 2  ;;  %v514_v8 = vadd.f32 %v513_v0, %v492_v54  ;;  %v500_v30 = vadd.f32 %v499_v10, %v498_v56  ;;  %v1597_v31 = vmul.f32 0.125, %v458_v9  ;;  %v728_v54 = vld [vmem:[#allocation7 + $0x38] sm:$0xff]  ;;  %845 = vmatpush.msra.mxu3 %v744_v55  ;;  %v727_v0 = vld [vmem:[#allocation7 + $0x30] sm:$0xff]  ;;  %v726_v10 = vld [vmem:[#allocation7 + $0x28] sm:$0xff] }
  0xc9   : > { %v468_v13 = vadd.f32 %v467_v5, %v466_v61  ;;  %v509_v14 = vrot.slane %v508_v6, 2  ;;  %v538_v18 = vmul.f32 0.125, %v506_v1  ;;  %v544_v19 = vmul.f32 %v1588_v2, %v1588_v2  ;;  %825 = vmatpush.msra.mxu2 %v728_v54  ;;  %v743_v1 = vld [vmem:[#allocation7 + $0xb0] sm:$0xff] }
  0xca   : > { %v474_v15 = vadd.f32 %v473_v7, %v472_v63  ;;  %v515_v16 = vrot.slane %v514_v8, 2  ;;  %v1590_v17 = vpop.f32.mrf.mxu0  ;;  %v1604_v50 = vpop.f32.mrf.mxu1  ;;  %v537_v52 = vmul.f32 0.125, %v500_v30  ;;  %v543_v56 = vmul.f32 %v1597_v31, %v1597_v31  ;;  %846 = vmatpush.msra.mxu3 %v743_v1  ;;  %v724_v30 = vld [vmem:[#allocation7 + $0x18] sm:$0xff] }
  0xcb   : > { %v477_v20 = vrot.slane %v1590_v17, 4  ;;  %v493_v21 = vmul.f32 %v1590_v17, %v1590_v17  ;;  %v469_v24 = vrot.slane %v468_v13, 1  ;;  %v510_v27 = vadd.f32 %v509_v14, %v508_v6  ;;  %826 = vmatpush.msra.mxu2 %v727_v0  ;;  %v780_v0 = vld [vmem:[#allocation7 + $0x1d8] sm:$0xff] }
  0xcc   : > { %v475_v28 = vrot.slane %v474_v15, 1  ;;  %v516_v29 = vadd.f32 %v515_v16, %v514_v8  ;;  %v550_v40 = vsub.f32 %v538_v18, %v544_v19  ;;  %v483_v63 = vrot.slane %v1604_v50, 4  ;;  %847 = vmatpush.msra.mxu3 %v742_v11  ;;  %v725_v19 = vld [vmem:[#allocation7 + $0x20] sm:$0xff]  ;;  %v800_v1 = vld [vmem:[#allocation7 + $0x278] sm:$0xff]  ;;  %v815_v11 = vld [vmem:[#allocation7 + $0x2f0] sm:$0xff] }
  0xcd   : > { %v478_v32 = vadd.f32 %v477_v20, %v1590_v17  ;;  %v519_v33 = vrot.slane %v493_v21, 4  ;;  %v470_v36 = vadd.f32 %v469_v24, %v468_v13  ;;  %v511_v37 = vrot.slane %v510_v27, 1  ;;  %827 = vmatpush.msra.mxu2 %v726_v10  ;;  %v741_v20 = vld [vmem:[#allocation7 + $0xa0] sm:$0xff]  ;;  %v768_v24 = vld [vmem:[#allocation7 + $0x178] sm:$0xff]  ;;  %v799_v10 = vld [vmem:[#allocation7 + $0x270] sm:$0xff] }
  0xce   : > { %v476_v38 = vadd.f32 %v475_v28, %v474_v15  ;;  %v517_v39 = vrot.slane %v516_v29, 1  ;;  %v556_v3 = vmax.f32 %v550_v40, 0.0  ;;  %v494_v5 = vmul.f32 %v1604_v50, %v1604_v50  ;;  %848 = vmatpush.msra.mxu3 %v741_v20  ;;  %857 = vmatpush.msrb.mxu0 %v768_v24  ;;  %v739_v40 = vld [vmem:[#allocation7 + $0x90] sm:$0xff]  ;;  %v814_v20 = vld [vmem:[#allocation7 + $0x2e8] sm:$0xff] }
  0xcf   : > { %v479_v41 = vrot.slane %v478_v32, 2  ;;  %v520_v42 = vadd.f32 %v519_v33, %v493_v21  ;;  %v512_v44 = vadd.f32 %v511_v37, %v510_v27  ;;  %v1600_v47 = vmul.f32 0.125, %v470_v36  ;;  %828 = vmatpush.msra.mxu2 %v725_v19  ;;  %v784_v27 = vld [vmem:[#allocation7 + $0x1f8] sm:$0xff]  ;;  %v767_v36 = vld [vmem:[#allocation7 + $0x170] sm:$0xff]  ;;  %v798_v19 = vld [vmem:[#allocation7 + $0x268] sm:$0xff] }
  0xd0   : > { %v518_v48 = vadd.f32 %v517_v39, %v516_v29  ;;  %v1602_v49 = vmul.f32 0.125, %v476_v38  ;;  %v484_v9 = vadd.f32 %v483_v63, %v1604_v50  ;;  %v549_v12 = vsub.f32 %v537_v52, %v543_v56  ;;  %877 = vmatpush.msrb.mxu1 %v784_v27  ;;  %v783_v37 = vld [vmem:[#allocation7 + $0x1f0] sm:$0xff]  ;;  %858 = vmatpush.msrb.mxu0 %v767_v36  ;;  %v738_v52 = vld [vmem:[#allocation7 + $0x88] sm:$0xff]  ;;  %v765_v56 = vld [vmem:[#allocation7 + $0x160] sm:$0xff] }
  0xd1   : > { %v480_v53 = vadd.f32 %v479_v41, %v478_v32  ;;  %v539_v57 = vmul.f32 0.125, %v512_v44  ;;  %v545_v58 = vmul.f32 %v1600_v47, %v1600_v47  ;;  %v521_v62 = vrot.slane %v520_v42, 2  ;;  %v740_v32 = vld [vmem:[#allocation7 + $0x98] sm:$0xff]  ;;  %829 = vmatpush.msra.mxu2 %v724_v30  ;;  %v723_v39 = vld [vmem:[#allocation7 + $0x10] sm:$0xff]  ;;  %v782_v44 = vld [vmem:[#allocation7 + $0x1e8] sm:$0xff] }
  0xd2   : > { %v540_v59 = vmul.f32 0.125, %v518_v48  ;;  %v546_v60 = vmul.f32 %v1602_v49, %v1602_v49  ;;  %v525_v14 = vrot.slane %v494_v5, 4  ;;  %v1618_v21 = vadd.f32 1e-05, %v556_v3  ;;  %849 = vmatpush.msra.mxu3 %v740_v32  ;;  %878 = vmatpush.msrb.mxu1 %v783_v37  ;;  %v764_v63 = vld [vmem:[#allocation7 + $0x158] sm:$0xff]  ;;  %v761_v27 = vld [vmem:[#allocation7 + $0x140] sm:$0xff] }
  0xd3   : > { %v481_v61 = vrot.slane %v480_v53, 1  ;;  %v551_v4 = vsub.f32 %v539_v57, %v545_v58  ;;  %v522_v8 = vadd.f32 %v521_v62, %v520_v42  ;;  %v485_v22 = vrot.slane %v484_v9, 2  ;;  %830 = vmatpush.msra.mxu2 %v723_v39  ;;  %859 = vmatpush.msrb.mxu0 %v766_v43  ;;  %v781_v57 = vld [vmem:[#allocation7 + $0x1e0] sm:$0xff]  ;;  %v760_v37 = vld [vmem:[#allocation7 + $0x138] sm:$0xff] }
  0xd4   : > { %v552_v6 = vsub.f32 %v540_v59, %v546_v60  ;;  %v526_v23 = vadd.f32 %v525_v14, %v494_v5  ;;  %v555_v33 = vmax.f32 %v549_v12, 0.0  ;;  %1199 = vrsqrt.f32 %v1618_v21  ;;  %850 = vmatpush.msra.mxu3 %v739_v40  ;;  %879 = vmatpush.msrb.mxu1 %v782_v44  ;;  %v721_v59 = vld [vmem:[#allocation7] sm:$0xff]  ;;  %v796_v39 = vld [vmem:[#allocation7 + $0x258] sm:$0xff] }
  0xd5   : > { %v482_v7 = vadd.f32 %v481_v61, %v480_v53  ;;  %v557_v13 = vmax.f32 %v551_v4, 0.0  ;;  %v523_v16 = vrot.slane %v522_v8, 1  ;;  %v486_v41 = vadd.f32 %v485_v22, %v484_v9  ;;  %831 = vmatpush.msra.mxu2 %v722_v51  ;;  %860 = vmatpush.msrb.mxu0 %v765_v56  ;;  %v737_v60 = vld [vmem:[#allocation7 + $0x80] sm:$0xff]  ;;  %v816_v4 = vld [vmem:[#allocation7 + $0x2f8] sm:$0xff]  ;;  %v759_v51 = vld [vmem:[#allocation7 + $0x130] sm:$0xff] }
  0xd6   : > { %v558_v15 = vmax.f32 %v552_v6, 0.0  ;;  %v527_v42 = vrot.slane %v526_v23, 2  ;;  %v1628_v53 = vadd.f32 1e-05, %v555_v33  ;;  %851 = vmatpush.msra.mxu3 %v738_v52  ;;  %880 = vmatpush.msrb.mxu1 %v781_v57  ;;  %v797_v30 = vld [vmem:[#allocation7 + $0x260] sm:$0xff]  ;;  %v775_v52 = vld [vmem:[#allocation7 + $0x1b0] sm:$0xff]  ;;  %vm586_vm3 = vweird.f32 %v1618_v21 }
  0xd7   : > { %v1616_v18 = vmul.f32 0.125, %v482_v7  ;;  %v524_v29 = vadd.f32 %v523_v16, %v522_v8  ;;  %v1622_v34 = vadd.f32 1e-05, %v557_v13  ;;  %v487_v54 = vrot.slane %v486_v41, 1  ;;  %832 = vmatpush.msra.mxu2 %v721_v59  ;;  %861 = vmatpush.msrb.mxu0 %v764_v63  ;;  %v763_v7 = vld [vmem:[#allocation7 + $0x150] sm:$0xff]  ;;  %v778_v16 = vld [vmem:[#allocation7 + $0x1c8] sm:$0xff] }
  0xd8   : > { %v1620_v28 = vadd.f32 1e-05, %v558_v15  ;;  %v528_v55 = vadd.f32 %v527_v42, %v526_v23  ;;  %852 = vmatpush.msra.mxu3 %v737_v60  ;;  %881 = vmatpush.msrb.mxu1 %v780_v0  ;;  %v779_v8 = vld [vmem:[#allocation7 + $0x1d0] sm:$0xff]  ;;  %v762_v15 = vld [vmem:[#allocation7 + $0x148] sm:$0xff]  ;;  %v813_v33 = vld [vmem:[#allocation7 + $0x2e0] sm:$0xff] }
  0xd9   : > { %v547_v35 = vmul.f32 %v1616_v18, %v1616_v18  ;;  %v541_v38 = vmul.f32 0.125, %v524_v29  ;;  %v488_v61 = vadd.f32 %v487_v54, %v486_v41  ;;  %897 = vmatpush.msrb.mxu2 %v800_v1  ;;  %862 = vmatpush.msrb.mxu0 %v763_v7  ;;  %v777_v29 = vld [vmem:[#allocation7 + $0x1c0] sm:$0xff]  ;;  %v812_v41 = vld [vmem:[#allocation7 + $0x2d8] sm:$0xff]  ;;  %v795_v54 = vld [vmem:[#allocation7 + $0x250] sm:$0xff]  ;;  %vm596_vm11 = vweird.f32 %v1622_v34 }
  0xda   : > { %1201 = vrsqrt.f32 %v1620_v28  ;;  %v529_v62 = vrot.slane %v528_v55, 1  ;;  %v1633_v5 = vpop.eup %1199  ;;  %917 = vmatpush.msrb.mxu3 %v816_v4  ;;  %882 = vmatpush.msrb.mxu1 %v779_v8  ;;  %v811_v56 = vld [vmem:[#allocation7 + $0x2d0] sm:$0xff]  ;;  %v758_v60 = vld [vmem:[#allocation7 + $0x128] sm:$0xff]  ;;  %v757_v0 = vld [vmem:[#allocation7 + $0x120] sm:$0xff]  ;;  %vm606_vm8 = vweird.f32 %v1620_v28 }
  0xdb   : > { %v553_v48 = vsub.f32 %v541_v38, %v547_v35  ;;  %1203 = vrsqrt.f32 %v1622_v34  ;;  %v1641_v13 = vmul.f32 0.125, %v488_v61  ;;  %898 = vmatpush.msrb.mxu2 %v799_v10  ;;  %863 = vmatpush.msrb.mxu0 %v762_v15  ;;  %v581_v22 = vmul.f32 %v1633_v5, %v1618_v21  ;;  %v776_v38 = vld [vmem:[#allocation7 + $0x1b8] sm:$0xff]  ;;  %v774_v61 = vld [vmem:[#allocation7 + $0x1a8] sm:$0xff]  ;;  %v773_v1 = vld [vmem:[#allocation7 + $0x1a0] sm:$0xff] }
  0xdc   : > { %1205 = vrsqrt.f32 %v1628_v53  ;;  %v530_v6 = vadd.f32 %v529_v62, %v528_v55  ;;  %918 = vmatpush.msrb.mxu3 %v815_v11  ;;  %883 = vmatpush.msrb.mxu1 %v778_v16  ;;  %v794_v62 = vld [vmem:[#allocation7 + $0x248] sm:$0xff]  ;;  %v793_v8 = vld [vmem:[#allocation7 + $0x240] sm:$0xff]  ;;  %v756_v11 = vld [vmem:[#allocation7 + $0x118] sm:$0xff]  ;;  %vm587_vm1 = vweird.f32 %v1633_v5 }
  0xdd   : > { %v559_v58 = vmax.f32 %v553_v48, 0.0  ;;  %v548_v24 = vmul.f32 %v1641_v13, %v1641_v13  ;;  %899 = vmatpush.msrb.mxu2 %v798_v19  ;;  %864 = vmatpush.msrb.mxu0 %v761_v27  ;;  %v582_v42 = vmul.f32 %v1633_v5, %v581_v22  ;;  %v810_v63 = vld [vmem:[#allocation7 + $0x2c8] sm:$0xff]  ;;  %v809_v10 = vld [vmem:[#allocation7 + $0x2c0] sm:$0xff]  ;;  %v772_v15 = vld [vmem:[#allocation7 + $0x198] sm:$0xff] }
  0xde   : > { %v542_v14 = vmul.f32 0.125, %v530_v6  ;;  %919 = vmatpush.msrb.mxu3 %v814_v20  ;;  %884 = vmatpush.msrb.mxu1 %v777_v29  ;;  %v792_v16 = vld [vmem:[#allocation7 + $0x238] sm:$0xff]  ;;  %v791_v27 = vld [vmem:[#allocation7 + $0x230] sm:$0xff]  ;;  %vm1679_vm5 = vmor %vm586_vm3, %vm587_vm1  ;;  %vm576_vm1 = vweird.f32 %v1628_v53  ;;  %vm641_vm3 = vcmask 1040384  }
  0xdf   : > { %v1631_v3 = vadd.f32 1e-05, %v559_v58  ;;  %900 = vmatpush.msrb.mxu2 %v797_v30  ;;  %865 = vmatpush.msrb.mxu0 %v760_v37  ;;  %v583_v4 = vmul.f32 0.5, %v582_v42  ;;  %v808_v22 = vld [vmem:[#allocation7 + $0x2b8] sm:$0xff]  ;;  %v770_v37 = vld [vmem:[#allocation7 + $0x188] sm:$0xff]  ;;  %v805_v21 = vld [vmem:[#allocation7 + $0x2a0] sm:$0xff] }
  0xe0   : > { %v1636_v9 = vpop.eup %1201  ;;  %v554_v36 = vsub.f32 %v542_v14, %v548_v24  ;;  %920 = vmatpush.msrb.mxu3 %v813_v33  ;;  %885 = vmatpush.msrb.mxu1 %v776_v38  ;;  %v771_v24 = vld [vmem:[#allocation7 + $0x190] sm:$0xff]  ;;  %v754_v33 = vld [vmem:[#allocation7 + $0x108] sm:$0xff] }
  0xe1   : > { %1207 = vrsqrt.f32 %v1631_v3  ;;  %v1639_v12 = vpop.eup %1203  ;;  %v601_v23 = vmul.f32 %v1636_v9, %v1620_v28  ;;  %901 = vmatpush.msrb.mxu2 %v796_v39  ;;  %866 = vmatpush.msrb.mxu0 %v759_v51  ;;  %v584_v29 = vsub.f32 1.5, %v583_v4  ;;  %v790_v38 = vld [vmem:[#allocation7 + $0x228] sm:$0xff]  ;;  %vm607_vm4 = vweird.f32 %v1636_v9  ;;  %v769_v51 = vld [vmem:[#allocation7 + $0x180] sm:$0xff] }
  0xe2   : > { %v591_v32 = vmul.f32 %v1639_v12, %v1622_v34  ;;  %v1651_v35 = vpop.eup %1205  ;;  %v560_v48 = vmax.f32 %v554_v36, 0.0  ;;  %921 = vmatpush.msrb.mxu3 %v812_v41  ;;  %886 = vmatpush.msrb.mxu1 %v775_v52  ;;  %v789_v52 = vld [vmem:[#allocation7 + $0x220] sm:$0xff]  ;;  %vm616_vm6 = vweird.f32 %v1631_v3  ;;  %vm597_vm7 = vweird.f32 %v1639_v12  ;;  %vm1697_vm10 = vmor %vm606_vm8, %vm607_vm4  ;;  %v803_v34 = vld [vmem:[#allocation7 + $0x290] sm:$0xff] }
  0xe3   : > { %v602_v43 = vmul.f32 %v1636_v9, %v601_v23  ;;  %v571_v57 = vmul.f32 %v1651_v35, %v1628_v53  ;;  %902 = vmatpush.msrb.mxu2 %v795_v54  ;;  %867 = vmatpush.msrb.mxu0 %v758_v60  ;;  %v755_v23 = vld [vmem:[#allocation7 + $0x110] sm:$0xff]  ;;  %v585_v54 = vmul.f32 %v1633_v5, %v584_v29  ;;  %vm1710_vm12 = vmor %vm596_vm11, %vm597_vm7  ;;  %vm577_vm14 = vweird.f32 %v1651_v35 }
  0xe4   : > { %v592_v55 = vmul.f32 %v1639_v12, %v591_v32  ;;  %v1663_v59 = vadd.f32 1e-05, %v560_v48  ;;  %922 = vmatpush.msrb.mxu3 %v811_v56  ;;  %887 = vmatpush.msrb.mxu1 %v774_v61  ;;  %v807_v32 = vld [vmem:[#allocation7 + $0x2b0] sm:$0xff]  ;;  %vm578_vm4 = vmor %vm576_vm1, %vm577_vm14  ;;  %vm649_vm7 = vcmask 1042432   ;;  %vm984_vm11 = vcmask 7168  }
  0xe5   : > { %v603_v6 = vmul.f32 0.5, %v602_v43  ;;  %903 = vmatpush.msrb.mxu2 %v794_v62  ;;  %868 = vmatpush.msrb.mxu0 %v757_v0  ;;  %v572_v19 = vmul.f32 %v1651_v35, %v571_v57  ;;  %v806_v43 = vld [vmem:[#allocation7 + $0x2a8] sm:$0xff]  ;;  %v804_v0 = vld [vmem:[#allocation7 + $0x298] sm:$0xff]  ;;  %v589_v4 = vsel %vm1679_vm5, %v1633_v5, %v585_v54  ;;  %vm643_vm5 = vcmask 1041408  }
  0xe6   : > { %1209 = vrsqrt.f32 %v1663_v59  ;;  %v593_v14 = vmul.f32 0.5, %v592_v55  ;;  %923 = vmatpush.msrb.mxu3 %v810_v63  ;;  %888 = vmatpush.msrb.mxu1 %v773_v1  ;;  %v788_v63 = vld [vmem:[#allocation7 + $0x218] sm:$0xff]  ;;  %v787_v1 = vld [vmem:[#allocation7 + $0x210] sm:$0xff]  ;;  %v786_v5 = vld [vmem:[#allocation7 + $0x208] sm:$0xff]  ;;  %vm626_vm0 = vweird.f32 %v1663_v59 }
  0xe7   : > { %v1653_v40 = vpop.eup %1207  ;;  %904 = vmatpush.msrb.mxu2 %v793_v8  ;;  %869 = vmatpush.msrb.mxu0 %v756_v11  ;;  %v604_v30 = vsub.f32 1.5, %v603_v6  ;;  %v573_v41 = vmul.f32 0.5, %v572_v19 }
  0xe8   : > { %v611_v44 = vmul.f32 %v1653_v40, %v1631_v3  ;;  %924 = vmatpush.msrb.mxu3 %v809_v10  ;;  %889 = vmatpush.msrb.mxu1 %v772_v15  ;;  %v594_v36 = vsub.f32 1.5, %v593_v14  ;;  %vm617_vm2 = vweird.f32 %v1653_v40  ;;  %v802_v14 = vld [vmem:[#allocation7 + $0x288] sm:$0xff] }
  0xe9   : > { %905 = vmatpush.msrb.mxu2 %v792_v16  ;;  %870 = vmatpush.msrb.mxu0 %v755_v23  ;;  %v605_v56 = vmul.f32 %v1636_v9, %v604_v30  ;;  %vm1690_vm9 = vmor %vm616_vm6, %vm617_vm2  ;;  %v574_v3 = vsub.f32 1.5, %v573_v41  ;;  %vm647_vm6 = vcmask 1044483  }
  0xea   : > { %v612_v58 = vmul.f32 %v1653_v40, %v611_v44  ;;  %925 = vmatpush.msrb.mxu3 %v808_v22  ;;  %890 = vmatpush.msrb.mxu1 %v771_v24  ;;  %v753_v44 = vld [vmem:[#allocation7 + $0x100] sm:$0xff]  ;;  %v595_v57 = vmul.f32 %v1639_v12, %v594_v36  ;;  %v561_v24 = vld [vmem:[#allocation6] ss:$2 sm:$0x3f] }
  0xeb   : > { %906 = vmatpush.msrb.mxu2 %v791_v27  ;;  %871 = vmatpush.msrb.mxu0 %v754_v33  ;;  %v575_v11 = vmul.f32 %v1651_v35, %v574_v3 }
  0xec   : > { %v613_v7 = vmul.f32 0.5, %v612_v58  ;;  %v1668_v39 = vpop.eup %1209  ;;  %926 = vmatpush.msrb.mxu3 %v807_v32  ;;  %891 = vmatpush.msrb.mxu1 %v770_v37 }
  0xed   : > { %v621_v48 = vmul.f32 %v1668_v39, %v1663_v59  ;;  %907 = vmatpush.msrb.mxu2 %v790_v38  ;;  %872 = vmatpush.msrb.mxu0 %v753_v44  ;;  %vm627_vm13 = vweird.f32 %v1668_v39  ;;  %v579_v59 = vsel %vm578_vm4, %v1651_v35, %v575_v11 }
  0xee   : > { %v614_v20 = vsub.f32 1.5, %v613_v7  ;;  %927 = vmatpush.msrb.mxu3 %v806_v43  ;;  %892 = vmatpush.msrb.mxu1 %v769_v51  ;;  %v599_v7 = vsel %vm1710_vm12, %v1639_v12, %v595_v57  ;;  %v785_v12 = vld [vmem:[#allocation7 + $0x200] sm:$0xff]  ;;  %vm628_vm2 = vmor %vm626_vm0, %vm627_vm13 }
  0xef   : > { %v622_v60 = vmul.f32 %v1668_v39, %v621_v48  ;;  %908 = vmatpush.msrb.mxu2 %v789_v52  ;;  %v637_v19 = vrot.slane %v599_v7, 6 }
  0xf0   : > { %v615_v42 = vmul.f32 %v1653_v40, %v614_v20  ;;  %928 = vmatpush.msrb.mxu3 %v805_v21  ;;  %v801_v20 = vld [vmem:[#allocation7 + $0x280] sm:$0xff] }
  0xf1   : > { %v623_v62 = vmul.f32 0.5, %v622_v60  ;;  %909 = vmatpush.msrb.mxu2 %v788_v63 }
  0xf2   : > { %v619_v28 = vsel %vm1690_vm9, %v1653_v40, %v615_v42  ;;  %v609_v40 = vsel %vm1697_vm10, %v1636_v9, %v605_v56  ;;  %929 = vmatpush.msrb.mxu3 %v804_v0  ;;  %v636_v9 = vrot.slane %v589_v4, 7 }
  0xf3   : > { %v639_v8 = vrot.slane %v619_v28, 4  ;;  %v624_v10 = vsub.f32 1.5, %v623_v62  ;;  %910 = vmatpush.msrb.mxu2 %v787_v1  ;;  %v638_v15 = vrot.slane %v609_v40, 5 }
  0xf4   : > { %930 = vmatpush.msrb.mxu3 %v803_v34  ;;  %v642_v27 = vsel %vm641_vm3, %v579_v59, %v636_v9 }
  0xf5   : > { %v625_v16 = vmul.f32 %v1668_v39, %v624_v10  ;;  %911 = vmatpush.msrb.mxu2 %v786_v5  ;;  %v646_v23 = vsel %vm645_vm15, %v638_v15, %v639_v8  ;;  %v644_v29 = vsel %vm643_vm5, %v642_v27, %v637_v19 }
  0xf6   : > { %931 = vmatpush.msrb.mxu3 %v802_v14 }
  0xf7   : > { %v629_v22 = vsel %vm628_vm2, %v1668_v39, %v625_v16  ;;  %912 = vmatpush.msrb.mxu2 %v785_v12 }
  0xf8   : > { %v640_v53 = vrot.slane %v629_v22, 3  ;;  %932 = vmatpush.msrb.mxu3 %v801_v20 }
  0xfa   : > { %v648_v30 = vsel %vm647_vm6, %v646_v23, %v640_v53 }
  0xfb   : > { %v650_v32 = vsel %vm649_vm7, %v644_v29, %v648_v30 }
  0xfc   : > { %v652_v33 = vmul.f32 %v650_v32, %v561_v24 }
  0xfe   : > { %v657_v36 = vperm.slane %v652_v33, 3  ;;  %v658_v37 = vperm.slane %v652_v33, 4  ;;  %v659_v38 = vperm.slane %v652_v33, 5  ;;  %v654_v39 = vperm.slane %v652_v33, 0 }
  0xff   : > { %v655_v41 = vperm.slane %v652_v33, 1  ;;  %v656_v35 = vperm.slane %v652_v33, 2 }
 0x100   : > { %v669_v42 = vmul.f32 %v657_v36, %v1602_v49  ;;  %v670_v43 = vmul.f32 %v658_v37, %v1616_v18  ;;  %v671_v44 = vmul.f32 %v659_v38, %v1641_v13  ;;  %v666_v56 = vmul.f32 %v654_v39, %v1597_v31  ;;  %v563_v49 = vld [vmem:[#allocation6 + $0x1] ss:$2 sm:$0x3f] }
 0x101   : > { %v667_v48 = vmul.f32 %v655_v41, %v1588_v2  ;;  %v668_v51 = vmul.f32 %v656_v35, %v1600_v47  ;;  %v690_v47 = vmul.f32 %v654_v39, %v1564_v25  ;;  %v691_v61 = vmul.f32 %v655_v41, %v1566_v26 }
 0x102   : > { %v680_v52 = vrot.slane %v669_v42, 5  ;;  %v681_v54 = vrot.slane %v670_v43, 4  ;;  %v682_v55 = vrot.slane %v671_v44, 3  ;;  %v692_v31 = vmul.f32 %v656_v35, %v1576_v45 }
 0x103   : > { %v678_v21 = vrot.slane %v667_v48, 7  ;;  %v679_v57 = vrot.slane %v668_v51, 6  ;;  %v693_v28 = vmul.f32 %v657_v36, %v1578_v46  ;;  %v695_v26 = vmul.f32 %v659_v38, %v1604_v50 }
 0x104   : > { %v685_v58 = vsel %vm645_vm15, %v680_v52, %v681_v54  ;;  %v694_v45 = vmul.f32 %v658_v37, %v1590_v17 }
 0x105   : > { %v686_v60 = vsel %vm647_vm6, %v685_v58, %v682_v55  ;;  %v683_v18 = vsel %vm641_vm3, %v666_v56, %v678_v21 }
 0x106   : > { %v684_v13 = vsel %vm643_vm5, %v683_v18, %v679_v57 }
 0x107   : > { %v687_v2 = vsel %vm649_vm7, %v684_v13, %v686_v60 }
 0x108   : > { %v689_v3 = vsub.f32 %v563_v49, %v687_v2  ;;  %v955_v49 = vld [vmem:[#allocation9] sm:$0x1] }
 0x10a   : > { %v697_v62 = vperm.slane %v689_v3, 0  ;;  %v698_v63 = vperm.slane %v689_v3, 1  ;;  %v699_v0 = vperm.slane %v689_v3, 2  ;;  %v700_v1 = vperm.slane %v689_v3, 3 }
 0x10b   : > { %v701_v7 = vperm.slane %v689_v3, 4  ;;  %v702_v8 = vperm.slane %v689_v3, 5  ;;  %v956_v3 = vld [vmem:[#allocation9 + $0x1] sm:$0x1] }
 0x10c   : > { %v709_v4 = vadd.f32 %v697_v62, %v690_v47  ;;  %v710_v6 = vadd.f32 %v698_v63, %v691_v61  ;;  %v711_v40 = vadd.f32 %v699_v0, %v692_v31  ;;  %v712_v34 = vadd.f32 %v700_v1, %v693_v28  ;;  %v1197_v0 = vld [vmem:[#allocation9 + $0x2] ss:$0 sm:$0xff] }
 0x10d   : > { %v713_v46 = vadd.f32 %v701_v7, %v694_v45  ;;  %v714_v14 = vadd.f32 %v702_v8, %v695_v26 }
 0x10e   : > { %v715_v10 = vmax.f32 %v709_v4, 0.0  ;;  %v716_v5 = vmax.f32 %v710_v6, 0.0  ;;  %v717_v11 = vmax.f32 %v711_v40, 0.0  ;;  %v718_v25 = vmax.f32 %v712_v34, 0.0  ;;  %v1198_v6 = vld [vmem:[#allocation9 + $0x3] ss:$0 sm:$0xff] }
 0x10f   : > { %v719_v9 = vmax.f32 %v713_v46, 0.0  ;;  %v720_v15 = vmax.f32 %v714_v14, 0.0 }
 0x110   : > { %833 = vmatmul.f32.vlgmr.msra.gmra.mxu2 %v715_v10  ;;  %853 = vmatmul.f32.vlgmr.msra.gmra.mxu3 %v716_v5 }
 0x111   : > { %873 = vmatmul.f32.vlgmr.msrb.gmra.mxu0 %v717_v11  ;;  %893 = vmatmul.f32.vlgmr.msrb.gmra.mxu1 %v718_v25 }
 0x118   : > { %913 = vmatmul.f32.vlgmr.msrb.gmra.mxu2 %v719_v9  ;;  %933 = vmatmul.f32.vlgmr.msrb.gmra.mxu3 %v720_v15 }
 0x18e   : > { %v874_v20 = vpop.f32.mrf.mxu0  ;;  %v894_v23 = vpop.f32.mrf.mxu1 }
 0x193   : > { %v834_v16 = vpop.f32.mrf.mxu2  ;;  %v854_v12 = vpop.f32.mrf.mxu3 }
 0x194   : > { %v855_v19 = vadd.f32 %v854_v12, %v834_v16 }
 0x196   : > { %v875_v22 = vadd.f32 %v874_v20, %v855_v19 }
 0x198   : > { %v895_v59 = vadd.f32 %v894_v23, %v875_v22 }
 0x19b   : > { %v914_v50 = vpop.f32.mrf.mxu2  ;;  %v934_v24 = vpop.f32.mrf.mxu3 }
 0x19c   : > { %v915_v53 = vadd.f32 %v914_v50, %v895_v59 }
 0x19e   : > { %v935_v27 = vadd.f32 %v934_v24, %v915_v53 }
 0x1a0   : > { %v937_v17 = vrot.slane %v935_v27, 4  ;;  %v943_v29 = vmul.f32 %v935_v27, %v935_v27 }
 0x1a2   : > { %v938_v30 = vadd.f32 %v937_v17, %v935_v27  ;;  %v944_v32 = vrot.slane %v943_v29, 4 }
 0x1a4   : > { %v939_v33 = vrot.slane %v938_v30, 2  ;;  %v945_v36 = vadd.f32 %v944_v32, %v943_v29 }
 0x1a6   : > { %v940_v37 = vadd.f32 %v939_v33, %v938_v30  ;;  %v946_v38 = vrot.slane %v945_v36, 2 }
 0x1a8   : > { %v947_v39 = vadd.f32 %v946_v38, %v945_v36  ;;  %v941_v41 = vrot.slane %v940_v37, 1 }
 0x1aa   : > { %v948_v35 = vrot.slane %v947_v39, 1  ;;  %v942_v42 = vadd.f32 %v941_v41, %v940_v37 }
 0x1ac   : > { %v949_v43 = vadd.f32 %v948_v35, %v947_v39  ;;  %v950_v44 = vmul.f32 0.125, %v942_v42 }
 0x1ae   : > { %v951_v48 = vmul.f32 0.125, %v949_v43  ;;  %v952_v51 = vmul.f32 %v950_v44, %v950_v44 }
 0x1b0   : > { %v953_v52 = vsub.f32 %v951_v48, %v952_v51 }
 0x1b2   : > { %v954_v54 = vmax.f32 %v953_v52, 0.0 }
 0x1b4   : > { %v957_v55 = vadd.f32 1e-05, %v954_v54 }
 0x1b6   : > { %1211 = vrsqrt.f32 %v957_v55  ;;  %vm964_vm9 = vweird.f32 %v957_v55 }
 0x1bc   : > { %v1212_v56 = vpop.eup %1211 }
 0x1bd   : > { %v959_v21 = vmul.f32 %v1212_v56, %v957_v55  ;;  %vm965_vm8 = vweird.f32 %v1212_v56 }
 0x1be   : > { %vm966_vm10 = vmor %vm964_vm9, %vm965_vm8 }
 0x1bf   : > { %v960_v57 = vmul.f32 %v1212_v56, %v959_v21 }
 0x1c1   : > { %v961_v58 = vmul.f32 0.5, %v960_v57 }
 0x1c3   : > { %v962_v60 = vsub.f32 1.5, %v961_v58 }
 0x1c5   : > { %v963_v18 = vmul.f32 %v1212_v56, %v962_v60 }
 0x1c7   : > { %v967_v13 = vsel %vm966_vm10, %v1212_v56, %v963_v18 }
 0x1c8   : > { %v968_v2 = vmul.f32 %v967_v13, %v955_v49 }
 0x1ca   : > { %v969_v47 = vmul.f32 %v968_v2, %v950_v44  ;;  %v971_v61 = vperm.slane %v968_v2, 0 }
 0x1cc   : > { %v970_v31 = vsub.f32 %v956_v3, %v969_v47  ;;  %v972_v28 = vmul.f32 %v971_v61, %v935_v27 }
 0x1ce   : > { %v973_v62 = vperm.slane %v970_v31, 0 }
 0x1d0   : > { %v974_v63 = vadd.f32 %v973_v62, %v972_v28 }
 0x1d2   : > { %v975_v1 = vmax.f32 %v974_v63, 0.0 }
 0x1d4   : > { %v979_v4 = vmul.f32 %v1197_v0, %v975_v1 }
 0x1d6   : > { %980 = vadd.xlane.f32.xlu0 %v979_v4 }
 0x249   : > { %v981_v40 = vpop.xlane.xlu0 %980 }
 0x24a   : > { %v983_v34 = vadd.f32 %v1198_v6, %v981_v40 }
 0x24c   : > { %985 = vst.msk [vmem:[%s303_s15] sm:$0xff] %vm984_vm11, %v983_v34 }
 0x24d PF: > { %p17_p3 = scmp.ge.s32.totalorder %s1504_s30, 6   ;;  %s1790_s18 = smov %s1397_s19 }
 0x24e   : > { %s1791_s19 = smov %s1401_s20  ;;  %s1792_s20 = smov %s1515_s9 }
 0x24f   : > { %s1793_s21 = smov %s1504_s30  ;;  %19 = sbr.rel (!%p17_p3) target bundleno = 5 (0x5), region = 97 }
 0x254   :  { %1005 = vsyncpa [#allocation3], 1 }
 0x255   :  { %1007 = vsyncpa [#allocation3 + $0x1], 1 }
 0x256   :  { %1008 = vsyncpa [#allocation5], 1 }
 0x257   :  { %1009 = vsyncpa [#allocation8], 1 }

</bundles_post_ra>
